<compile_context>
chip_gen: v7x
topology: tpu7x:2x2x1
jax: 0.10.0
libtpu: 0.0.40
codegen_flags: <defaults>
</compile_context>

<pallas_src>
import math

import jax
import jax.numpy as jnp
from jax.experimental import pallas as pl
from jax.experimental.pallas import tpu as pltpu


def _make_kernel(H, W, HW, c_in, c_out, c_half, relu_slope, eps):
    # Flat-index offsets of the 9 taps (ky, kx); tap id t = ky*3 + kx.
    offs = [(ky - 1) * W + (kx - 1) for ky in range(3) for kx in range(3)]
    inv_hw = 1.0 / HW

    def leaky(v):
        return jnp.where(v >= 0, v, relu_slope * v)

    def conv3x3(x, w_ref, b_ref, mask_ref):
        # x: (c, HW) f32, w_ref: (9, c_out, c), b_ref: (c_out, 1),
        # mask_ref: (9, 1, HW) f32.
        # No im2col scratch: accumulate the nine tap matmuls directly.
        acc = None
        for t, off in enumerate(offs):
            if off == 0:
                tap = x                                   # center tap: no shift/mask
            else:
                # tap[:, i] = x[:, i + off] (zero outside the image):
                # jnp.roll-style shift by -off; wrap-around killed by the mask.
                tap = pltpu.roll(x, (-off) % HW, axis=1) * mask_ref[t]
            part = jnp.dot(w_ref[t], tap, preferred_element_type=jnp.float32)
            acc = part if acc is None else acc + part
        return acc + b_ref[...]

    def kernel(x_ref, mask_ref, w1_ref, b1_ref, g_ref, bt_ref,
               w2_ref, b2_ref, wid_ref, bid_ref, o_ref):
        x = x_ref[0].astype(jnp.float32)                              # (Cin, HW)

        # Identity 1x1 computed right after loading x so x dies before conv_2.
        ident = jnp.dot(wid_ref[...], x,
                        preferred_element_type=jnp.float32) + bid_ref[...]

        # conv_1 (3x3, padding=1)
        out = conv3x3(x, w1_ref, b1_ref, mask_ref)                    # (Cout, HW)

        # Half Instance Norm on rows [0:c_half], applied as one fused affine
        # pass over the whole tile (no (Cout, HW) concatenate / extra copy).
        row = jax.lax.broadcasted_iota(jnp.int32, (c_out, 1), 0)
        in_half = row < c_half
        mean = jnp.sum(out, axis=1, keepdims=True) * inv_hw           # (Cout, 1)
        var = jnp.sum(out * out, axis=1, keepdims=True) * inv_hw - mean * mean
        var = jnp.maximum(var, 0.0)          # guard one-pass cancellation
        scale = jnp.where(in_half, g_ref[...] * jax.lax.rsqrt(var + eps), 1.0)
        shift = jnp.where(in_half, bt_ref[...] - mean * scale, 0.0)
        out = out * scale + shift

        out = leaky(out)                                              # relu_1
        out = leaky(conv3x3(out, w2_ref, b2_ref, mask_ref))           # conv_2 + relu_2
        o_ref[0] = (out + ident).astype(o_ref.dtype)

    return kernel


def unet_conv_block(x_nchw, params, relu_slope=0.1, eps=1e-5):
    N, Cin, H, W = x_nchw.shape
    Cout = params["b1"].shape[0]
    c_half = params["gamma"].shape[0]
    HW = H * W

    # NCHW -> (N, C, H*W): channels on sublanes, pixels on lanes (free reshape).
    x_flat = x_nchw.reshape(N, Cin, HW)

    def tap_w(w):  # (Cout, Cin, 3, 3) -> (9, Cout, Cin), tap id t = ky*3 + kx
        co, ci = w.shape[0], w.shape[1]
        return jnp.transpose(w, (2, 3, 0, 1)).reshape(9, co, ci).astype(jnp.float32)

    w1 = tap_w(params["w1"])
    w2 = tap_w(params["w2"])
    wid = params["wid"][:, :, 0, 0].astype(jnp.float32)               # (Cout, Cin)
    b1 = params["b1"].reshape(Cout, 1).astype(jnp.float32)
    b2 = params["b2"].reshape(Cout, 1).astype(jnp.float32)
    bid = params["bid"].reshape(Cout, 1).astype(jnp.float32)
    # gamma/beta padded to Cout rows; the kernel's channel mask selects rows.
    pad = Cout - c_half
    gamma = jnp.concatenate(
        [params["gamma"].astype(jnp.float32), jnp.ones((pad,), jnp.float32)]
    ).reshape(Cout, 1)
    beta = jnp.concatenate(
        [params["beta"].astype(jnp.float32), jnp.zeros((pad,), jnp.float32)]
    ).reshape(Cout, 1)

    # Static zero-padding masks for the 9 taps, computed once on the host.
    hh = jnp.arange(HW, dtype=jnp.int32) // W
    ww = jnp.arange(HW, dtype=jnp.int32) % W
    masks = []
    for ky in range(3):
        for kx in range(3):
            dy, dx = ky - 1, kx - 1
            m = ((hh + dy >= 0) & (hh + dy < H) & (ww + dx >= 0) & (ww + dx < W))
            masks.append(m.astype(jnp.float32))
    mask = jnp.stack(masks).reshape(9, 1, HW)

    kernel = _make_kernel(H, W, HW, Cin, Cout, c_half, relu_slope, eps)

    def full_spec(shape):
        nd = len(shape)
        return pl.BlockSpec(shape, lambda n, _nd=nd: (0,) * _nd)

    # VMEM budget from the actual per-step blocks (double-buffered) + headroom,
    # clamped to stay within every generation's physical VMEM (v7x: 64 MiB).
    itemsize = x_nchw.dtype.itemsize
    per_step = (
        Cin * HW * itemsize                                    # x block
        + Cout * HW * itemsize                                 # out block
        + 9 * HW * 4                                           # tap masks
        + 9 * Cout * Cin * 4 + 9 * Cout * Cout * 4 + Cout * Cin * 4   # weights
        + 6 * Cout * 4                                         # biases / gamma / beta
    )
    vmem_limit = int(min(max(2 * per_step + 4 * 2**20, 16 * 2**20), 64 * 2**20))

    out_flat = pl.pallas_call(
        kernel,
        out_shape=jax.ShapeDtypeStruct((N, Cout, HW), x_nchw.dtype),
        grid=(N,),
        in_specs=[
            pl.BlockSpec((1, Cin, HW), lambda n: (n, 0, 0)),   # x
            full_spec((9, 1, HW)),                             # zero-pad tap masks
            full_spec((9, Cout, Cin)),                         # conv_1 weight, per tap
            full_spec((Cout, 1)),                              # conv_1 bias
            full_spec((Cout, 1)),                              # HIN gamma (padded)
            full_spec((Cout, 1)),                              # HIN beta (padded)
            full_spec((9, Cout, Cout)),                        # conv_2 weight, per tap
            full_spec((Cout, 1)),                              # conv_2 bias
            full_spec((Cout, Cin)),                            # identity 1x1 weight
            full_spec((Cout, 1)),                              # identity bias
        ],
        out_specs=pl.BlockSpec((1, Cout, HW), lambda n: (n, 0, 0)),
        compiler_params=pltpu.CompilerParams(
            dimension_semantics=("parallel",),
            vmem_limit_bytes=vmem_limit),
    )(x_flat, mask, w1, b1, gamma, beta, w2, b2, wid, bid)

    # (N, Cout, H*W) -> NCHW (free reshape)
    return out_flat.reshape(N, Cout, H, W)


def ref_forward(x, p, relu_slope=0.1, eps=1e-5):
    """Pure-JAX reference reproducing the PyTorch forward (NCHW)."""
    HIGH = jax.lax.Precision.HIGHEST

    def conv(x, w, b, pad):
        y = jax.lax.conv_general_dilated(
            x, w, window_strides=(1, 1),
            padding=[(pad, pad), (pad, pad)],
            dimension_numbers=("NCHW", "OIHW", "NCHW"),
            precision=HIGH)
        return y + b[None, :, None, None]

    leaky = lambda v: jnp.where(v >= 0, v, relu_slope * v)

    out = conv(x, p["w1"], p["b1"], 1)
    c_half = p["gamma"].shape[0]
    o1, o2 = out[:, :c_half], out[:, c_half:]
    mean = o1.mean(axis=(2, 3), keepdims=True)
    var = o1.var(axis=(2, 3), keepdims=True)            # biased, like InstanceNorm2d
    o1 = (o1 - mean) / jnp.sqrt(var + eps)
    o1 = o1 * p["gamma"][None, :, None, None] + p["beta"][None, :, None, None]
    out = jnp.concatenate([o1, o2], axis=1)
    out = leaky(out)
    out = leaky(conv(out, p["w2"], p["b2"], 1))
    out = out + conv(x, p["wid"], p["bid"], 0)
    return out


if __name__ == "__main__":
    N, Cin, Cout, H, W = 2, 4, 8, 16, 16
    key = jax.random.PRNGKey(0)
    ks = jax.random.split(key, 9)
    x = jax.random.normal(ks[0], (N, Cin, H, W), jnp.float32)
    params = {
        "w1": jax.random.normal(ks[1], (Cout, Cin, 3, 3), jnp.float32) * 0.2,
        "b1": jax.random.normal(ks[2], (Cout,), jnp.float32) * 0.1,
        "w2": jax.random.normal(ks[3], (Cout, Cout, 3, 3), jnp.float32) * 0.2,
        "b2": jax.random.normal(ks[4], (Cout,), jnp.float32) * 0.1,
        "wid": jax.random.normal(ks[5], (Cout, Cin, 1, 1), jnp.float32) * 0.2,
        "bid": jax.random.normal(ks[6], (Cout,), jnp.float32) * 0.1,
        "gamma": 1.0 + 0.5 * jax.random.normal(ks[7], (Cout // 2,), jnp.float32),
        "beta": 0.1 * jax.random.normal(ks[8], (Cout // 2,), jnp.float32),
    }

    out = jax.block_until_ready(unet_conv_block(x, params))
    ref = jax.block_until_ready(ref_forward(x, params))

    assert out.shape == (N, Cout, H, W), out.shape
    max_err = float(jnp.max(jnp.abs(out - ref)))
    # Kernel matmuls run at default (bf16-pass) MXU precision, while the
    # reference uses HIGHEST; allow bf16-level mismatch. Layout/roll/mask bugs
    # would produce O(1) errors and still fail this.
    assert max_err < 5e-2, f"max abs error too large: {max_err}"
    print("KERNEL_OK")
</pallas_src>

<mosaic_0001>
module attributes {stable_mosaic.version = 11 : i64} {
  func.func @kernel(%arg0: i32, %arg1: memref<1x4x256xf32, #tpu.memory_space<vmem>>, %arg2: memref<9x1x256xf32, #tpu.memory_space<vmem>>, %arg3: memref<9x8x4xf32, #tpu.memory_space<vmem>>, %arg4: memref<8x1xf32, #tpu.memory_space<vmem>>, %arg5: memref<8x1xf32, #tpu.memory_space<vmem>>, %arg6: memref<8x1xf32, #tpu.memory_space<vmem>>, %arg7: memref<9x8x8xf32, #tpu.memory_space<vmem>>, %arg8: memref<8x1xf32, #tpu.memory_space<vmem>>, %arg9: memref<8x4xf32, #tpu.memory_space<vmem>>, %arg10: memref<8x1xf32, #tpu.memory_space<vmem>>, %arg11: memref<1x8x256xf32, #tpu.memory_space<vmem>>) attributes {dimension_semantics = [#tpu.dimension_semantics<parallel>], iteration_bounds = array<i64: 2>, scalar_prefetch = 0 : i64, scratch_operands = 0 : i64, tpu.core_type = #tpu.core_type<tc>, window_params = [{transform_indices = @transform_0, window_bounds = array<i64: 1, 4, 256>}, {pipeline_mode = #tpu.pipeline_mode<synchronous>, transform_indices = @transform_1, window_bounds = array<i64: 9, 1, 256>}, {pipeline_mode = #tpu.pipeline_mode<synchronous>, transform_indices = @transform_2, window_bounds = array<i64: 9, 8, 4>}, {pipeline_mode = #tpu.pipeline_mode<synchronous>, transform_indices = @transform_3, window_bounds = array<i64: 8, 1>}, {pipeline_mode = #tpu.pipeline_mode<synchronous>, transform_indices = @transform_4, window_bounds = array<i64: 8, 1>}, {pipeline_mode = #tpu.pipeline_mode<synchronous>, transform_indices = @transform_5, window_bounds = array<i64: 8, 1>}, {pipeline_mode = #tpu.pipeline_mode<synchronous>, transform_indices = @transform_6, window_bounds = array<i64: 9, 8, 8>}, {pipeline_mode = #tpu.pipeline_mode<synchronous>, transform_indices = @transform_7, window_bounds = array<i64: 8, 1>}, {pipeline_mode = #tpu.pipeline_mode<synchronous>, transform_indices = @transform_8, window_bounds = array<i64: 8, 4>}, {pipeline_mode = #tpu.pipeline_mode<synchronous>, transform_indices = @transform_9, window_bounds = array<i64: 8, 1>}, {transform_indices = @transform_10, window_bounds = array<i64: 1, 8, 256>}]} {
    %c0 = arith.constant 0 : index
    %c0_0 = arith.constant 0 : index
    %c0_1 = arith.constant 0 : index
    %0 = vector.load %arg1[%c0, %c0_0, %c0_1] : memref<1x4x256xf32, #tpu.memory_space<vmem>>, vector<1x4x256xf32>
    %1 = vector.shape_cast %0 : vector<1x4x256xf32> to vector<4x256xf32>
    %c0_2 = arith.constant 0 : index
    %c0_3 = arith.constant 0 : index
    %2 = vector.load %arg9[%c0_2, %c0_3] : memref<8x4xf32, #tpu.memory_space<vmem>>, vector<8x4xf32>
    %cst = arith.constant dense<0.000000e+00> : vector<8x256xf32>
    %3 = tpu.matmul %2, %1, %cst {dimension_numbers = #tpu.dot_dimension_numbers<[1], [0], [0], [1], [0, 0, 1, 1], [], []>} : vector<8x4xf32>, vector<4x256xf32>, vector<8x256xf32> -> vector<8x256xf32>
    %c0_4 = arith.constant 0 : index
    %c0_5 = arith.constant 0 : index
    %4 = vector.load %arg10[%c0_4, %c0_5] : memref<8x1xf32, #tpu.memory_space<vmem>>, vector<8x1xf32>
    %5 = vector.broadcast %4 : vector<8x1xf32> to vector<8x256xf32>
    %6 = arith.addf %3, %5 : vector<8x256xf32>
    %c17_i32 = arith.constant 17 : i32
    %7 = tpu.dynamic_rotate %1 by %c17_i32 dim 1 : vector<4x256xf32>, i32 -> vector<4x256xf32>
    %c0_6 = arith.constant 0 : index
    %c0_7 = arith.constant 0 : index
    %c0_8 = arith.constant 0 : index
    %8 = vector.load %arg2[%c0_6, %c0_7, %c0_8] : memref<9x1x256xf32, #tpu.memory_space<vmem>>, vector<1x1x256xf32>
    %9 = vector.shape_cast %8 : vector<1x1x256xf32> to vector<1x256xf32>
    %10 = vector.broadcast %9 : vector<1x256xf32> to vector<4x256xf32>
    %11 = arith.mulf %7, %10 : vector<4x256xf32>
    %c0_9 = arith.constant 0 : index
    %c0_10 = arith.constant 0 : index
    %c0_11 = arith.constant 0 : index
    %12 = vector.load %arg3[%c0_9, %c0_10, %c0_11] : memref<9x8x4xf32, #tpu.memory_space<vmem>>, vector<1x8x4xf32>
    %13 = vector.shape_cast %12 : vector<1x8x4xf32> to vector<8x4xf32>
    %cst_12 = arith.constant dense<0.000000e+00> : vector<8x256xf32>
    %14 = tpu.matmul %13, %11, %cst_12 {dimension_numbers = #tpu.dot_dimension_numbers<[1], [0], [0], [1], [0, 0, 1, 1], [], []>} : vector<8x4xf32>, vector<4x256xf32>, vector<8x256xf32> -> vector<8x256xf32>
    %c16_i32 = arith.constant 16 : i32
    %15 = tpu.dynamic_rotate %1 by %c16_i32 dim 1 : vector<4x256xf32>, i32 -> vector<4x256xf32>
    %c1 = arith.constant 1 : index
    %c0_13 = arith.constant 0 : index
    %c0_14 = arith.constant 0 : index
    %16 = vector.load %arg2[%c1, %c0_13, %c0_14] : memref<9x1x256xf32, #tpu.memory_space<vmem>>, vector<1x1x256xf32>
    %17 = vector.shape_cast %16 : vector<1x1x256xf32> to vector<1x256xf32>
    %18 = vector.broadcast %17 : vector<1x256xf32> to vector<4x256xf32>
    %19 = arith.mulf %15, %18 : vector<4x256xf32>
    %c1_15 = arith.constant 1 : index
    %c0_16 = arith.constant 0 : index
    %c0_17 = arith.constant 0 : index
    %20 = vector.load %arg3[%c1_15, %c0_16, %c0_17] : memref<9x8x4xf32, #tpu.memory_space<vmem>>, vector<1x8x4xf32>
    %21 = vector.shape_cast %20 : vector<1x8x4xf32> to vector<8x4xf32>
    %cst_18 = arith.constant dense<0.000000e+00> : vector<8x256xf32>
    %22 = tpu.matmul %21, %19, %cst_18 {dimension_numbers = #tpu.dot_dimension_numbers<[1], [0], [0], [1], [0, 0, 1, 1], [], []>} : vector<8x4xf32>, vector<4x256xf32>, vector<8x256xf32> -> vector<8x256xf32>
    %23 = arith.addf %14, %22 : vector<8x256xf32>
    %c15_i32 = arith.constant 15 : i32
    %24 = tpu.dynamic_rotate %1 by %c15_i32 dim 1 : vector<4x256xf32>, i32 -> vector<4x256xf32>
    %c2 = arith.constant 2 : index
    %c0_19 = arith.constant 0 : index
    %c0_20 = arith.constant 0 : index
    %25 = vector.load %arg2[%c2, %c0_19, %c0_20] : memref<9x1x256xf32, #tpu.memory_space<vmem>>, vector<1x1x256xf32>
    %26 = vector.shape_cast %25 : vector<1x1x256xf32> to vector<1x256xf32>
    %27 = vector.broadcast %26 : vector<1x256xf32> to vector<4x256xf32>
    %28 = arith.mulf %24, %27 : vector<4x256xf32>
    %c2_21 = arith.constant 2 : index
    %c0_22 = arith.constant 0 : index
    %c0_23 = arith.constant 0 : index
    %29 = vector.load %arg3[%c2_21, %c0_22, %c0_23] : memref<9x8x4xf32, #tpu.memory_space<vmem>>, vector<1x8x4xf32>
    %30 = vector.shape_cast %29 : vector<1x8x4xf32> to vector<8x4xf32>
    %cst_24 = arith.constant dense<0.000000e+00> : vector<8x256xf32>
    %31 = tpu.matmul %30, %28, %cst_24 {dimension_numbers = #tpu.dot_dimension_numbers<[1], [0], [0], [1], [0, 0, 1, 1], [], []>} : vector<8x4xf32>, vector<4x256xf32>, vector<8x256xf32> -> vector<8x256xf32>
    %32 = arith.addf %23, %31 : vector<8x256xf32>
    %c1_i32 = arith.constant 1 : i32
    %33 = tpu.dynamic_rotate %1 by %c1_i32 dim 1 : vector<4x256xf32>, i32 -> vector<4x256xf32>
    %c3 = arith.constant 3 : index
    %c0_25 = arith.constant 0 : index
    %c0_26 = arith.constant 0 : index
    %34 = vector.load %arg2[%c3, %c0_25, %c0_26] : memref<9x1x256xf32, #tpu.memory_space<vmem>>, vector<1x1x256xf32>
    %35 = vector.shape_cast %34 : vector<1x1x256xf32> to vector<1x256xf32>
    %36 = vector.broadcast %35 : vector<1x256xf32> to vector<4x256xf32>
    %37 = arith.mulf %33, %36 : vector<4x256xf32>
    %c3_27 = arith.constant 3 : index
    %c0_28 = arith.constant 0 : index
    %c0_29 = arith.constant 0 : index
    %38 = vector.load %arg3[%c3_27, %c0_28, %c0_29] : memref<9x8x4xf32, #tpu.memory_space<vmem>>, vector<1x8x4xf32>
    %39 = vector.shape_cast %38 : vector<1x8x4xf32> to vector<8x4xf32>
    %cst_30 = arith.constant dense<0.000000e+00> : vector<8x256xf32>
    %40 = tpu.matmul %39, %37, %cst_30 {dimension_numbers = #tpu.dot_dimension_numbers<[1], [0], [0], [1], [0, 0, 1, 1], [], []>} : vector<8x4xf32>, vector<4x256xf32>, vector<8x256xf32> -> vector<8x256xf32>
    %41 = arith.addf %32, %40 : vector<8x256xf32>
    %c4 = arith.constant 4 : index
    %c0_31 = arith.constant 0 : index
    %c0_32 = arith.constant 0 : index
    %42 = vector.load %arg3[%c4, %c0_31, %c0_32] : memref<9x8x4xf32, #tpu.memory_space<vmem>>, vector<1x8x4xf32>
    %43 = vector.shape_cast %42 : vector<1x8x4xf32> to vector<8x4xf32>
    %cst_33 = arith.constant dense<0.000000e+00> : vector<8x256xf32>
    %44 = tpu.matmul %43, %1, %cst_33 {dimension_numbers = #tpu.dot_dimension_numbers<[1], [0], [0], [1], [0, 0, 1, 1], [], []>} : vector<8x4xf32>, vector<4x256xf32>, vector<8x256xf32> -> vector<8x256xf32>
    %45 = arith.addf %41, %44 : vector<8x256xf32>
    %c255_i32 = arith.constant 255 : i32
    %46 = tpu.dynamic_rotate %1 by %c255_i32 dim 1 : vector<4x256xf32>, i32 -> vector<4x256xf32>
    %c5 = arith.constant 5 : index
    %c0_34 = arith.constant 0 : index
    %c0_35 = arith.constant 0 : index
    %47 = vector.load %arg2[%c5, %c0_34, %c0_35] : memref<9x1x256xf32, #tpu.memory_space<vmem>>, vector<1x1x256xf32>
    %48 = vector.shape_cast %47 : vector<1x1x256xf32> to vector<1x256xf32>
    %49 = vector.broadcast %48 : vector<1x256xf32> to vector<4x256xf32>
    %50 = arith.mulf %46, %49 : vector<4x256xf32>
    %c5_36 = arith.constant 5 : index
    %c0_37 = arith.constant 0 : index
    %c0_38 = arith.constant 0 : index
    %51 = vector.load %arg3[%c5_36, %c0_37, %c0_38] : memref<9x8x4xf32, #tpu.memory_space<vmem>>, vector<1x8x4xf32>
    %52 = vector.shape_cast %51 : vector<1x8x4xf32> to vector<8x4xf32>
    %cst_39 = arith.constant dense<0.000000e+00> : vector<8x256xf32>
    %53 = tpu.matmul %52, %50, %cst_39 {dimension_numbers = #tpu.dot_dimension_numbers<[1], [0], [0], [1], [0, 0, 1, 1], [], []>} : vector<8x4xf32>, vector<4x256xf32>, vector<8x256xf32> -> vector<8x256xf32>
    %54 = arith.addf %45, %53 : vector<8x256xf32>
    %c241_i32 = arith.constant 241 : i32
    %55 = tpu.dynamic_rotate %1 by %c241_i32 dim 1 : vector<4x256xf32>, i32 -> vector<4x256xf32>
    %c6 = arith.constant 6 : index
    %c0_40 = arith.constant 0 : index
    %c0_41 = arith.constant 0 : index
    %56 = vector.load %arg2[%c6, %c0_40, %c0_41] : memref<9x1x256xf32, #tpu.memory_space<vmem>>, vector<1x1x256xf32>
    %57 = vector.shape_cast %56 : vector<1x1x256xf32> to vector<1x256xf32>
    %58 = vector.broadcast %57 : vector<1x256xf32> to vector<4x256xf32>
    %59 = arith.mulf %55, %58 : vector<4x256xf32>
    %c6_42 = arith.constant 6 : index
    %c0_43 = arith.constant 0 : index
    %c0_44 = arith.constant 0 : index
    %60 = vector.load %arg3[%c6_42, %c0_43, %c0_44] : memref<9x8x4xf32, #tpu.memory_space<vmem>>, vector<1x8x4xf32>
    %61 = vector.shape_cast %60 : vector<1x8x4xf32> to vector<8x4xf32>
    %cst_45 = arith.constant dense<0.000000e+00> : vector<8x256xf32>
    %62 = tpu.matmul %61, %59, %cst_45 {dimension_numbers = #tpu.dot_dimension_numbers<[1], [0], [0], [1], [0, 0, 1, 1], [], []>} : vector<8x4xf32>, vector<4x256xf32>, vector<8x256xf32> -> vector<8x256xf32>
    %63 = arith.addf %54, %62 : vector<8x256xf32>
    %c240_i32 = arith.constant 240 : i32
    %64 = tpu.dynamic_rotate %1 by %c240_i32 dim 1 : vector<4x256xf32>, i32 -> vector<4x256xf32>
    %c7 = arith.constant 7 : index
    %c0_46 = arith.constant 0 : index
    %c0_47 = arith.constant 0 : index
    %65 = vector.load %arg2[%c7, %c0_46, %c0_47] : memref<9x1x256xf32, #tpu.memory_space<vmem>>, vector<1x1x256xf32>
    %66 = vector.shape_cast %65 : vector<1x1x256xf32> to vector<1x256xf32>
    %67 = vector.broadcast %66 : vector<1x256xf32> to vector<4x256xf32>
    %68 = arith.mulf %64, %67 : vector<4x256xf32>
    %c7_48 = arith.constant 7 : index
    %c0_49 = arith.constant 0 : index
    %c0_50 = arith.constant 0 : index
    %69 = vector.load %arg3[%c7_48, %c0_49, %c0_50] : memref<9x8x4xf32, #tpu.memory_space<vmem>>, vector<1x8x4xf32>
    %70 = vector.shape_cast %69 : vector<1x8x4xf32> to vector<8x4xf32>
    %cst_51 = arith.constant dense<0.000000e+00> : vector<8x256xf32>
    %71 = tpu.matmul %70, %68, %cst_51 {dimension_numbers = #tpu.dot_dimension_numbers<[1], [0], [0], [1], [0, 0, 1, 1], [], []>} : vector<8x4xf32>, vector<4x256xf32>, vector<8x256xf32> -> vector<8x256xf32>
    %72 = arith.addf %63, %71 : vector<8x256xf32>
    %c239_i32 = arith.constant 239 : i32
    %73 = tpu.dynamic_rotate %1 by %c239_i32 dim 1 : vector<4x256xf32>, i32 -> vector<4x256xf32>
    %c8 = arith.constant 8 : index
    %c0_52 = arith.constant 0 : index
    %c0_53 = arith.constant 0 : index
    %74 = vector.load %arg2[%c8, %c0_52, %c0_53] : memref<9x1x256xf32, #tpu.memory_space<vmem>>, vector<1x1x256xf32>
    %75 = vector.shape_cast %74 : vector<1x1x256xf32> to vector<1x256xf32>
    %76 = vector.broadcast %75 : vector<1x256xf32> to vector<4x256xf32>
    %77 = arith.mulf %73, %76 : vector<4x256xf32>
    %c8_54 = arith.constant 8 : index
    %c0_55 = arith.constant 0 : index
    %c0_56 = arith.constant 0 : index
    %78 = vector.load %arg3[%c8_54, %c0_55, %c0_56] : memref<9x8x4xf32, #tpu.memory_space<vmem>>, vector<1x8x4xf32>
    %79 = vector.shape_cast %78 : vector<1x8x4xf32> to vector<8x4xf32>
    %cst_57 = arith.constant dense<0.000000e+00> : vector<8x256xf32>
    %80 = tpu.matmul %79, %77, %cst_57 {dimension_numbers = #tpu.dot_dimension_numbers<[1], [0], [0], [1], [0, 0, 1, 1], [], []>} : vector<8x4xf32>, vector<4x256xf32>, vector<8x256xf32> -> vector<8x256xf32>
    %81 = arith.addf %72, %80 : vector<8x256xf32>
    %c0_58 = arith.constant 0 : index
    %c0_59 = arith.constant 0 : index
    %82 = vector.load %arg4[%c0_58, %c0_59] : memref<8x1xf32, #tpu.memory_space<vmem>>, vector<8x1xf32>
    %83 = vector.broadcast %82 : vector<8x1xf32> to vector<8x256xf32>
    %84 = arith.addf %81, %83 : vector<8x256xf32>
    %85 = tpu.iota {dimensions = array<i32: 0>} : vector<8x1xi32>
    %c4_i32 = arith.constant 4 : i32
    %86 = vector.broadcast %c4_i32 : i32 to vector<8x1xi32>
    %87 = arith.cmpi slt, %85, %86 : vector<8x1xi32>
    %cst_60 = arith.constant dense<0.000000e+00> : vector<8xf32>
    %88 = vector.multi_reduction <add>, %84, %cst_60 [1] : vector<8x256xf32> to vector<8xf32>
    %89 = vector.shape_cast %88 : vector<8xf32> to vector<8x1xf32>
    %cst_61 = arith.constant 3.906250e-03 : f32
    %90 = vector.broadcast %cst_61 : f32 to vector<8x1xf32>
    %91 = arith.mulf %89, %90 : vector<8x1xf32>
    %92 = arith.mulf %84, %84 : vector<8x256xf32>
    %cst_62 = arith.constant dense<0.000000e+00> : vector<8xf32>
    %93 = vector.multi_reduction <add>, %92, %cst_62 [1] : vector<8x256xf32> to vector<8xf32>
    %94 = vector.shape_cast %93 : vector<8xf32> to vector<8x1xf32>
    %cst_63 = arith.constant 3.906250e-03 : f32
    %95 = vector.broadcast %cst_63 : f32 to vector<8x1xf32>
    %96 = arith.mulf %94, %95 : vector<8x1xf32>
    %97 = arith.mulf %91, %91 : vector<8x1xf32>
    %98 = arith.subf %96, %97 : vector<8x1xf32>
    %cst_64 = arith.constant 0.000000e+00 : f32
    %99 = vector.broadcast %cst_64 : f32 to vector<8x1xf32>
    %100 = arith.maximumf %98, %99 : vector<8x1xf32>
    %c0_65 = arith.constant 0 : index
    %c0_66 = arith.constant 0 : index
    %101 = vector.load %arg5[%c0_65, %c0_66] : memref<8x1xf32, #tpu.memory_space<vmem>>, vector<8x1xf32>
    %cst_67 = arith.constant 9.99999974E-6 : f32
    %102 = vector.broadcast %cst_67 : f32 to vector<8x1xf32>
    %103 = arith.addf %100, %102 : vector<8x1xf32>
    %104 = math.rsqrt %103 : vector<8x1xf32>
    %105 = arith.mulf %101, %104 : vector<8x1xf32>
    %cst_68 = arith.constant 1.000000e+00 : f32
    %106 = vector.broadcast %cst_68 : f32 to vector<8x1xf32>
    %107 = arith.select %87, %105, %106 : vector<8x1xi1>, vector<8x1xf32>
    %c0_69 = arith.constant 0 : index
    %c0_70 = arith.constant 0 : index
    %108 = vector.load %arg6[%c0_69, %c0_70] : memref<8x1xf32, #tpu.memory_space<vmem>>, vector<8x1xf32>
    %109 = arith.mulf %91, %107 : vector<8x1xf32>
    %110 = arith.subf %108, %109 : vector<8x1xf32>
    %cst_71 = arith.constant 0.000000e+00 : f32
    %111 = vector.broadcast %cst_71 : f32 to vector<8x1xf32>
    %112 = arith.select %87, %110, %111 : vector<8x1xi1>, vector<8x1xf32>
    %113 = vector.broadcast %107 : vector<8x1xf32> to vector<8x256xf32>
    %114 = arith.mulf %84, %113 : vector<8x256xf32>
    %115 = vector.broadcast %112 : vector<8x1xf32> to vector<8x256xf32>
    %116 = arith.addf %114, %115 : vector<8x256xf32>
    %cst_72 = arith.constant 0.000000e+00 : f32
    %117 = vector.broadcast %cst_72 : f32 to vector<8x256xf32>
    %118 = arith.cmpf oge, %116, %117 : vector<8x256xf32>
    %cst_73 = arith.constant 1.000000e-01 : f32
    %119 = vector.broadcast %cst_73 : f32 to vector<8x256xf32>
    %120 = arith.mulf %119, %116 : vector<8x256xf32>
    %121 = arith.select %118, %116, %120 : vector<8x256xi1>, vector<8x256xf32>
    %c17_i32_74 = arith.constant 17 : i32
    %122 = tpu.dynamic_rotate %121 by %c17_i32_74 dim 1 : vector<8x256xf32>, i32 -> vector<8x256xf32>
    %c0_75 = arith.constant 0 : index
    %c0_76 = arith.constant 0 : index
    %c0_77 = arith.constant 0 : index
    %123 = vector.load %arg2[%c0_75, %c0_76, %c0_77] : memref<9x1x256xf32, #tpu.memory_space<vmem>>, vector<1x1x256xf32>
    %124 = vector.shape_cast %123 : vector<1x1x256xf32> to vector<1x256xf32>
    %125 = vector.broadcast %124 : vector<1x256xf32> to vector<8x256xf32>
    %126 = arith.mulf %122, %125 : vector<8x256xf32>
    %c0_78 = arith.constant 0 : index
    %c0_79 = arith.constant 0 : index
    %c0_80 = arith.constant 0 : index
    %127 = vector.load %arg7[%c0_78, %c0_79, %c0_80] : memref<9x8x8xf32, #tpu.memory_space<vmem>>, vector<1x8x8xf32>
    %128 = vector.shape_cast %127 : vector<1x8x8xf32> to vector<8x8xf32>
    %cst_81 = arith.constant dense<0.000000e+00> : vector<8x256xf32>
    %129 = tpu.matmul %128, %126, %cst_81 {dimension_numbers = #tpu.dot_dimension_numbers<[1], [0], [0], [1], [0, 0, 1, 1], [], []>} : vector<8x8xf32>, vector<8x256xf32>, vector<8x256xf32> -> vector<8x256xf32>
    %c16_i32_82 = arith.constant 16 : i32
    %130 = tpu.dynamic_rotate %121 by %c16_i32_82 dim 1 : vector<8x256xf32>, i32 -> vector<8x256xf32>
    %c1_83 = arith.constant 1 : index
    %c0_84 = arith.constant 0 : index
    %c0_85 = arith.constant 0 : index
    %131 = vector.load %arg2[%c1_83, %c0_84, %c0_85] : memref<9x1x256xf32, #tpu.memory_space<vmem>>, vector<1x1x256xf32>
    %132 = vector.shape_cast %131 : vector<1x1x256xf32> to vector<1x256xf32>
    %133 = vector.broadcast %132 : vector<1x256xf32> to vector<8x256xf32>
    %134 = arith.mulf %130, %133 : vector<8x256xf32>
    %c1_86 = arith.constant 1 : index
    %c0_87 = arith.constant 0 : index
    %c0_88 = arith.constant 0 : index
    %135 = vector.load %arg7[%c1_86, %c0_87, %c0_88] : memref<9x8x8xf32, #tpu.memory_space<vmem>>, vector<1x8x8xf32>
    %136 = vector.shape_cast %135 : vector<1x8x8xf32> to vector<8x8xf32>
    %cst_89 = arith.constant dense<0.000000e+00> : vector<8x256xf32>
    %137 = tpu.matmul %136, %134, %cst_89 {dimension_numbers = #tpu.dot_dimension_numbers<[1], [0], [0], [1], [0, 0, 1, 1], [], []>} : vector<8x8xf32>, vector<8x256xf32>, vector<8x256xf32> -> vector<8x256xf32>
    %138 = arith.addf %129, %137 : vector<8x256xf32>
    %c15_i32_90 = arith.constant 15 : i32
    %139 = tpu.dynamic_rotate %121 by %c15_i32_90 dim 1 : vector<8x256xf32>, i32 -> vector<8x256xf32>
    %c2_91 = arith.constant 2 : index
    %c0_92 = arith.constant 0 : index
    %c0_93 = arith.constant 0 : index
    %140 = vector.load %arg2[%c2_91, %c0_92, %c0_93] : memref<9x1x256xf32, #tpu.memory_space<vmem>>, vector<1x1x256xf32>
    %141 = vector.shape_cast %140 : vector<1x1x256xf32> to vector<1x256xf32>
    %142 = vector.broadcast %141 : vector<1x256xf32> to vector<8x256xf32>
    %143 = arith.mulf %139, %142 : vector<8x256xf32>
    %c2_94 = arith.constant 2 : index
    %c0_95 = arith.constant 0 : index
    %c0_96 = arith.constant 0 : index
    %144 = vector.load %arg7[%c2_94, %c0_95, %c0_96] : memref<9x8x8xf32, #tpu.memory_space<vmem>>, vector<1x8x8xf32>
    %145 = vector.shape_cast %144 : vector<1x8x8xf32> to vector<8x8xf32>
    %cst_97 = arith.constant dense<0.000000e+00> : vector<8x256xf32>
    %146 = tpu.matmul %145, %143, %cst_97 {dimension_numbers = #tpu.dot_dimension_numbers<[1], [0], [0], [1], [0, 0, 1, 1], [], []>} : vector<8x8xf32>, vector<8x256xf32>, vector<8x256xf32> -> vector<8x256xf32>
    %147 = arith.addf %138, %146 : vector<8x256xf32>
    %c1_i32_98 = arith.constant 1 : i32
    %148 = tpu.dynamic_rotate %121 by %c1_i32_98 dim 1 : vector<8x256xf32>, i32 -> vector<8x256xf32>
    %c3_99 = arith.constant 3 : index
    %c0_100 = arith.constant 0 : index
    %c0_101 = arith.constant 0 : index
    %149 = vector.load %arg2[%c3_99, %c0_100, %c0_101] : memref<9x1x256xf32, #tpu.memory_space<vmem>>, vector<1x1x256xf32>
    %150 = vector.shape_cast %149 : vector<1x1x256xf32> to vector<1x256xf32>
    %151 = vector.broadcast %150 : vector<1x256xf32> to vector<8x256xf32>
    %152 = arith.mulf %148, %151 : vector<8x256xf32>
    %c3_102 = arith.constant 3 : index
    %c0_103 = arith.constant 0 : index
    %c0_104 = arith.constant 0 : index
    %153 = vector.load %arg7[%c3_102, %c0_103, %c0_104] : memref<9x8x8xf32, #tpu.memory_space<vmem>>, vector<1x8x8xf32>
    %154 = vector.shape_cast %153 : vector<1x8x8xf32> to vector<8x8xf32>
    %cst_105 = arith.constant dense<0.000000e+00> : vector<8x256xf32>
    %155 = tpu.matmul %154, %152, %cst_105 {dimension_numbers = #tpu.dot_dimension_numbers<[1], [0], [0], [1], [0, 0, 1, 1], [], []>} : vector<8x8xf32>, vector<8x256xf32>, vector<8x256xf32> -> vector<8x256xf32>
    %156 = arith.addf %147, %155 : vector<8x256xf32>
    %c4_106 = arith.constant 4 : index
    %c0_107 = arith.constant 0 : index
    %c0_108 = arith.constant 0 : index
    %157 = vector.load %arg7[%c4_106, %c0_107, %c0_108] : memref<9x8x8xf32, #tpu.memory_space<vmem>>, vector<1x8x8xf32>
    %158 = vector.shape_cast %157 : vector<1x8x8xf32> to vector<8x8xf32>
    %cst_109 = arith.constant dense<0.000000e+00> : vector<8x256xf32>
    %159 = tpu.matmul %158, %121, %cst_109 {dimension_numbers = #tpu.dot_dimension_numbers<[1], [0], [0], [1], [0, 0, 1, 1], [], []>} : vector<8x8xf32>, vector<8x256xf32>, vector<8x256xf32> -> vector<8x256xf32>
    %160 = arith.addf %156, %159 : vector<8x256xf32>
    %c255_i32_110 = arith.constant 255 : i32
    %161 = tpu.dynamic_rotate %121 by %c255_i32_110 dim 1 : vector<8x256xf32>, i32 -> vector<8x256xf32>
    %c5_111 = arith.constant 5 : index
    %c0_112 = arith.constant 0 : index
    %c0_113 = arith.constant 0 : index
    %162 = vector.load %arg2[%c5_111, %c0_112, %c0_113] : memref<9x1x256xf32, #tpu.memory_space<vmem>>, vector<1x1x256xf32>
    %163 = vector.shape_cast %162 : vector<1x1x256xf32> to vector<1x256xf32>
    %164 = vector.broadcast %163 : vector<1x256xf32> to vector<8x256xf32>
    %165 = arith.mulf %161, %164 : vector<8x256xf32>
    %c5_114 = arith.constant 5 : index
    %c0_115 = arith.constant 0 : index
    %c0_116 = arith.constant 0 : index
    %166 = vector.load %arg7[%c5_114, %c0_115, %c0_116] : memref<9x8x8xf32, #tpu.memory_space<vmem>>, vector<1x8x8xf32>
    %167 = vector.shape_cast %166 : vector<1x8x8xf32> to vector<8x8xf32>
    %cst_117 = arith.constant dense<0.000000e+00> : vector<8x256xf32>
    %168 = tpu.matmul %167, %165, %cst_117 {dimension_numbers = #tpu.dot_dimension_numbers<[1], [0], [0], [1], [0, 0, 1, 1], [], []>} : vector<8x8xf32>, vector<8x256xf32>, vector<8x256xf32> -> vector<8x256xf32>
    %169 = arith.addf %160, %168 : vector<8x256xf32>
    %c241_i32_118 = arith.constant 241 : i32
    %170 = tpu.dynamic_rotate %121 by %c241_i32_118 dim 1 : vector<8x256xf32>, i32 -> vector<8x256xf32>
    %c6_119 = arith.constant 6 : index
    %c0_120 = arith.constant 0 : index
    %c0_121 = arith.constant 0 : index
    %171 = vector.load %arg2[%c6_119, %c0_120, %c0_121] : memref<9x1x256xf32, #tpu.memory_space<vmem>>, vector<1x1x256xf32>
    %172 = vector.shape_cast %171 : vector<1x1x256xf32> to vector<1x256xf32>
    %173 = vector.broadcast %172 : vector<1x256xf32> to vector<8x256xf32>
    %174 = arith.mulf %170, %173 : vector<8x256xf32>
    %c6_122 = arith.constant 6 : index
    %c0_123 = arith.constant 0 : index
    %c0_124 = arith.constant 0 : index
    %175 = vector.load %arg7[%c6_122, %c0_123, %c0_124] : memref<9x8x8xf32, #tpu.memory_space<vmem>>, vector<1x8x8xf32>
    %176 = vector.shape_cast %175 : vector<1x8x8xf32> to vector<8x8xf32>
    %cst_125 = arith.constant dense<0.000000e+00> : vector<8x256xf32>
    %177 = tpu.matmul %176, %174, %cst_125 {dimension_numbers = #tpu.dot_dimension_numbers<[1], [0], [0], [1], [0, 0, 1, 1], [], []>} : vector<8x8xf32>, vector<8x256xf32>, vector<8x256xf32> -> vector<8x256xf32>
    %178 = arith.addf %169, %177 : vector<8x256xf32>
    %c240_i32_126 = arith.constant 240 : i32
    %179 = tpu.dynamic_rotate %121 by %c240_i32_126 dim 1 : vector<8x256xf32>, i32 -> vector<8x256xf32>
    %c7_127 = arith.constant 7 : index
    %c0_128 = arith.constant 0 : index
    %c0_129 = arith.constant 0 : index
    %180 = vector.load %arg2[%c7_127, %c0_128, %c0_129] : memref<9x1x256xf32, #tpu.memory_space<vmem>>, vector<1x1x256xf32>
    %181 = vector.shape_cast %180 : vector<1x1x256xf32> to vector<1x256xf32>
    %182 = vector.broadcast %181 : vector<1x256xf32> to vector<8x256xf32>
    %183 = arith.mulf %179, %182 : vector<8x256xf32>
    %c7_130 = arith.constant 7 : index
    %c0_131 = arith.constant 0 : index
    %c0_132 = arith.constant 0 : index
    %184 = vector.load %arg7[%c7_130, %c0_131, %c0_132] : memref<9x8x8xf32, #tpu.memory_space<vmem>>, vector<1x8x8xf32>
    %185 = vector.shape_cast %184 : vector<1x8x8xf32> to vector<8x8xf32>
    %cst_133 = arith.constant dense<0.000000e+00> : vector<8x256xf32>
    %186 = tpu.matmul %185, %183, %cst_133 {dimension_numbers = #tpu.dot_dimension_numbers<[1], [0], [0], [1], [0, 0, 1, 1], [], []>} : vector<8x8xf32>, vector<8x256xf32>, vector<8x256xf32> -> vector<8x256xf32>
    %187 = arith.addf %178, %186 : vector<8x256xf32>
    %c239_i32_134 = arith.constant 239 : i32
    %188 = tpu.dynamic_rotate %121 by %c239_i32_134 dim 1 : vector<8x256xf32>, i32 -> vector<8x256xf32>
    %c8_135 = arith.constant 8 : index
    %c0_136 = arith.constant 0 : index
    %c0_137 = arith.constant 0 : index
    %189 = vector.load %arg2[%c8_135, %c0_136, %c0_137] : memref<9x1x256xf32, #tpu.memory_space<vmem>>, vector<1x1x256xf32>
    %190 = vector.shape_cast %189 : vector<1x1x256xf32> to vector<1x256xf32>
    %191 = vector.broadcast %190 : vector<1x256xf32> to vector<8x256xf32>
    %192 = arith.mulf %188, %191 : vector<8x256xf32>
    %c8_138 = arith.constant 8 : index
    %c0_139 = arith.constant 0 : index
    %c0_140 = arith.constant 0 : index
    %193 = vector.load %arg7[%c8_138, %c0_139, %c0_140] : memref<9x8x8xf32, #tpu.memory_space<vmem>>, vector<1x8x8xf32>
    %194 = vector.shape_cast %193 : vector<1x8x8xf32> to vector<8x8xf32>
    %cst_141 = arith.constant dense<0.000000e+00> : vector<8x256xf32>
    %195 = tpu.matmul %194, %192, %cst_141 {dimension_numbers = #tpu.dot_dimension_numbers<[1], [0], [0], [1], [0, 0, 1, 1], [], []>} : vector<8x8xf32>, vector<8x256xf32>, vector<8x256xf32> -> vector<8x256xf32>
    %196 = arith.addf %187, %195 : vector<8x256xf32>
    %c0_142 = arith.constant 0 : index
    %c0_143 = arith.constant 0 : index
    %197 = vector.load %arg8[%c0_142, %c0_143] : memref<8x1xf32, #tpu.memory_space<vmem>>, vector<8x1xf32>
    %198 = vector.broadcast %197 : vector<8x1xf32> to vector<8x256xf32>
    %199 = arith.addf %196, %198 : vector<8x256xf32>
    %cst_144 = arith.constant 0.000000e+00 : f32
    %200 = vector.broadcast %cst_144 : f32 to vector<8x256xf32>
    %201 = arith.cmpf oge, %199, %200 : vector<8x256xf32>
    %cst_145 = arith.constant 1.000000e-01 : f32
    %202 = vector.broadcast %cst_145 : f32 to vector<8x256xf32>
    %203 = arith.mulf %202, %199 : vector<8x256xf32>
    %204 = arith.select %201, %199, %203 : vector<8x256xi1>, vector<8x256xf32>
    %205 = arith.addf %204, %6 : vector<8x256xf32>
    %c0_146 = arith.constant 0 : index
    %c0_147 = arith.constant 0 : index
    %c0_148 = arith.constant 0 : index
    %206 = vector.load %arg11[%c0_146, %c0_147, %c0_148] : memref<1x8x256xf32, #tpu.memory_space<vmem>>, vector<1x8x256xf32>
    %207 = vector.shape_cast %206 : vector<1x8x256xf32> to vector<8x256xf32>
    %208 = vector.shape_cast %205 : vector<8x256xf32> to vector<1x8x256xf32>
    tpu.vector_store %arg11[%c0_146, %c0_147, %c0_148], %208 {strides = array<i32>} : memref<1x8x256xf32, #tpu.memory_space<vmem>>, vector<1x8x256xf32>,
    return
  }
  func.func @transform_0(%arg0: i32) -> (i32, i32, i32) {
    %c0_i32 = arith.constant 0 : i32
    %c0_i32_0 = arith.constant 0 : i32
    %c0_i32_1 = arith.constant 0 : i32
    return %arg0, %c0_i32, %c0_i32_0 : i32, i32, i32
  }
  func.func @transform_1(%arg0: i32) -> (i32, i32, i32) {
    %c0_i32 = arith.constant 0 : i32
    %c0_i32_0 = arith.constant 0 : i32
    %c0_i32_1 = arith.constant 0 : i32
    %c0_i32_2 = arith.constant 0 : i32
    return %c0_i32, %c0_i32_0, %c0_i32_1 : i32, i32, i32
  }
  func.func @transform_2(%arg0: i32) -> (i32, i32, i32) {
    %c0_i32 = arith.constant 0 : i32
    %c0_i32_0 = arith.constant 0 : i32
    %c0_i32_1 = arith.constant 0 : i32
    %c0_i32_2 = arith.constant 0 : i32
    return %c0_i32, %c0_i32_0, %c0_i32_1 : i32, i32, i32
  }
  func.func @transform_3(%arg0: i32) -> (i32, i32) {
    %c0_i32 = arith.constant 0 : i32
    %c0_i32_0 = arith.constant 0 : i32
    %c0_i32_1 = arith.constant 0 : i32
    return %c0_i32, %c0_i32_0 : i32, i32
  }
  func.func @transform_4(%arg0: i32) -> (i32, i32) {
    %c0_i32 = arith.constant 0 : i32
    %c0_i32_0 = arith.constant 0 : i32
    %c0_i32_1 = arith.constant 0 : i32
    return %c0_i32, %c0_i32_0 : i32, i32
  }
  func.func @transform_5(%arg0: i32) -> (i32, i32) {
    %c0_i32 = arith.constant 0 : i32
    %c0_i32_0 = arith.constant 0 : i32
    %c0_i32_1 = arith.constant 0 : i32
    return %c0_i32, %c0_i32_0 : i32, i32
  }
  func.func @transform_6(%arg0: i32) -> (i32, i32, i32) {
    %c0_i32 = arith.constant 0 : i32
    %c0_i32_0 = arith.constant 0 : i32
    %c0_i32_1 = arith.constant 0 : i32
    %c0_i32_2 = arith.constant 0 : i32
    return %c0_i32, %c0_i32_0, %c0_i32_1 : i32, i32, i32
  }
  func.func @transform_7(%arg0: i32) -> (i32, i32) {
    %c0_i32 = arith.constant 0 : i32
    %c0_i32_0 = arith.constant 0 : i32
    %c0_i32_1 = arith.constant 0 : i32
    return %c0_i32, %c0_i32_0 : i32, i32
  }
  func.func @transform_8(%arg0: i32) -> (i32, i32) {
    %c0_i32 = arith.constant 0 : i32
    %c0_i32_0 = arith.constant 0 : i32
    %c0_i32_1 = arith.constant 0 : i32
    return %c0_i32, %c0_i32_0 : i32, i32
  }
  func.func @transform_9(%arg0: i32) -> (i32, i32) {
    %c0_i32 = arith.constant 0 : i32
    %c0_i32_0 = arith.constant 0 : i32
    %c0_i32_1 = arith.constant 0 : i32
    return %c0_i32, %c0_i32_0 : i32, i32
  }
  func.func @transform_10(%arg0: i32) -> (i32, i32, i32) {
    %c0_i32 = arith.constant 0 : i32
    %c0_i32_0 = arith.constant 0 : i32
    %c0_i32_1 = arith.constant 0 : i32
    return %arg0, %c0_i32, %c0_i32_0 : i32, i32, i32
  }
}

</mosaic_0001>

<bundles_post_ra>
// kernel: tpu_custom_call.1
= control target key start
LH: loop header
LB: loop body
LE: loop exit
PB: predicated region body
PF: predicated region fallthrough
CT: control target
= control target key end

     0   :  { %15 = vsyncpa [#allocation3], 0  ;;  %s3073_s0 = inlined_call_operand.vmem [shape: f32[2,4,256], index: 0, kind: input, shape index: {}]   ;;  %s3074_s1 = inlined_call_operand.vmem [shape: f32[9,1,256], index: 1, kind: input, shape index: {}]   ;;  %s3075_s2 = inlined_call_operand.vmem [shape: f32[9,8,4], index: 2, kind: input, shape index: {}]   ;;  %s3076_s3 = inlined_call_operand.vmem [shape: f32[8,1], index: 3, kind: input, shape index: {}]   ;;  %s3077_s4 = inlined_call_operand.vmem [shape: f32[8,1], index: 4, kind: input, shape index: {}]   ;;  %s3078_s5 = inlined_call_operand.vmem [shape: f32[8,1], index: 5, kind: input, shape index: {}]   ;;  %s3079_s6 = inlined_call_operand.vmem [shape: f32[9,8,8], index: 6, kind: input, shape index: {}]   ;;  %s3080_s7 = inlined_call_operand.vmem [shape: f32[8,1], index: 7, kind: input, shape index: {}]   ;;  %s3081_s8 = inlined_call_operand.vmem [shape: f32[8,4], index: 8, kind: input, shape index: {}]   ;;  %s3082_s9 = inlined_call_operand.vmem [shape: f32[8,1], index: 9, kind: input, shape index: {}]   ;;  %s3083_s10 = inlined_call_operand.hbm [shape: f32[2,8,256], index: 10, kind: output, shape index: {}]  }
   0x1   :  { %17 = vsyncpa [#allocation3 + $0x1], 0  ;;  %s2570_s13 = smov 0   ;;  %s2572_s14 = smov 0  }
   0x2   :  { %s2574_s15 = smov 0   ;;  %s2576_s16 = smov 0  }
   0x3 LB: > { %s2591_s17 = sadd.s32 4294967295, %s2502_s16   ;;  %s2278_s18 = sadd.s32 4294967294, %s2502_s16   ;;  %s2502_s16 = sphi %s2576_s16, %s3092_s16   ;;  %s2498_s15 = sphi %s2574_s15, %s3091_s15   ;;  %s2494_s14 = sphi %s2572_s14, %s3090_s14   ;;  %s2490_s13 = sphi %s2570_s13, %s3089_s13  }
   0x4   : > { %s2595_s19 = sadd.s32 1, %s2502_s16   ;;  %s245_s20 = sadd.s32 1, %s2498_s15 }
   0x5   : > { %s242_s21 = ssub.s32 %s2502_s16, %s2595_s19  ;;  %p255_p0 = scmp.ne.s32.totalorder %s2498_s15, %s2494_s14 }
   0x6   : > { %p243_p1 = scmp.eq.s32.totalorder %s242_s21, 0  ;;  %p256_p2 = scmp.eq.s32.totalorder %s2591_s17, 1 }
   0x7   : > { %p261_p3 = scmp.ne.s32.totalorder %s2494_s14, %s2490_s13  ;;  %p262_p4 = scmp.eq.s32.totalorder %s2278_s18, 1 }
   0x8   : > { %s2606_s22 = scalar_select %p243_p1, %s2498_s15, %s245_s20  }
   0x9   : > { %p2608_p5 = por %p256_p2, %p255_p0  ;;  %p2612_p6 = por %p262_p4, %p261_p3 }
   0xa   : > { %p2281_p7 = scmp.ge.s32.totalorder %s2502_s16, 1  ;;  %p315_p8 = scmp.lt.s32.totalorder %s2502_s16, 3 }
   0xc   : > { %p316_p9 = pnand %p2281_p7, %p315_p8 }
   0xd   : > { %p353_p10 = scmp.lt.s32.totalorder (!%p316_p9), %s2591_s17, 1  ;;  %v2504_v0 = vmov (!%p316_p9), 0.0   ;;  %s2505_s30 = smov (!%p316_p9), 17   ;;  %vm372_vm0 = vcmask (!%p316_p9), 1043456   ;;  %v1371_v3 = vld [vmem:[%s3076_s3] sm:$0xff] (!%p316_p9)  ;;  %v2513_v4 = vmov (!%p316_p9), 0   ;;  %v453_v5 = vlaneseq (!%p316_p9) }
   0xe   : > { %319 = sbr.rel (%p316_p9) target bundleno = 1157 (0x485), region = 60  ;;  %570 = vmatprep.mubr.f32.mxu1 (!%p316_p9), %v2504_v0  ;;  %441 = vmatprep.mubr.f32.mxu0 (!%p316_p9), %v2504_v0  ;;  %s2506_s11 = smov (!%p316_p9), 16   ;;  %v458_v10 = vld [vmem:[%s3074_s1] sm:$0x3] (!%p316_p9)  ;;  %v2288_v11 = vld [vmem:[%s3074_s1 + $0x2] sm:$0x3] (!%p316_p9) }
   0xf   : > { %s2507_s12 = smov (!%p316_p9), 15   ;;  %s2508_s18 = smov (!%p316_p9), 1   ;;  %2435 = vset.pattern.permute.xlu0 (!%p316_p9), %v2513_v4  ;;  %2436 = vset.pattern.permute.xlu1 (!%p316_p9), %v2513_v4  ;;  %v2670_v6 = vshrl.u32 (!%p316_p9), %v453_v5, 7  ;;  %v2672_v7 = vand.u32 (!%p316_p9), 127, %v453_v5  ;;  %v2296_v18 = vld [vmem:[%s3074_s1 + $0x4] sm:$0x3] (!%p316_p9) }
  0x10   : > { %s2509_s20 = smov (!%p316_p9), 127   ;;  %s2510_s21 = smov (!%p316_p9), 113   ;;  %vm368_vm4 = vcmask (!%p316_p9), 31744   ;;  %v2289_v30 = vld [vmem:[%s3075_s2 + $0x8] sm:$0xff] (!%p316_p9)  ;;  %v2301_v34 = vld [vmem:[%s3074_s1 + $0x6] sm:$0x3] (!%p316_p9) }
  0x11   : > { %v2675_v8 = vsub.s32 (!%p316_p9), 0, %v2670_v6  ;;  %v2678_v9 = vsub.s32 (!%p316_p9), 1, %v2670_v6  ;;  %vm455_vm1 = vcmp.lt.s32.totalorder (!%p316_p9), %v2672_v7, 17  ;;  %vm477_vm2 = vcmp.lt.s32.totalorder (!%p316_p9), %v2672_v7, 16  ;;  %v472_v43 = vld [vmem:[%s3075_s2] sm:$0xff] (!%p316_p9)  ;;  %v2297_v48 = vld [vmem:[%s3075_s2 + $0x10] sm:$0xff] (!%p316_p9) }
  0x12   : > { %vm661_vm3 = vcmp.lt.s32.totalorder (!%p316_p9), %v2672_v7, 15  ;;  %vm767_vm5 = vcmp.lt.s32.totalorder (!%p316_p9), %v2672_v7, 1  ;;  %v2310_v49 = vld [vmem:[%s3074_s1 + $0xa] sm:$0x3] (!%p316_p9)  ;;  %vm951_vm6 = vcmp.lt.s32.totalorder (!%p316_p9), %v2672_v7, 127  ;;  %v2302_v54 = vld [vmem:[%s3075_s2 + $0x18] sm:$0xff] (!%p316_p9) }
  0x13   : > { %v2688_v14 = vrot.slane (!%p316_p9), %v458_v10, %v2678_v9  ;;  %v2692_v15 = vrot.slane (!%p316_p9), %v2288_v11, %v2675_v8  ;;  %v2695_v16 = vrot.slane (!%p316_p9), %v2288_v11, %v2678_v9  ;;  %v2698_v17 = vrot.slane (!%p316_p9), %v458_v10, %v2675_v8  ;;  %v2315_v56 = vld [vmem:[%s3074_s1 + $0xc] sm:$0x3] (!%p316_p9)  ;;  %s2514_s28 = smov (!%p316_p9), [#allocation2]  }
  0x14   : > { %v2716_v28 = vrot.slane (!%p316_p9), %v2296_v18, %v2678_v9  ;;  %v2735_v36 = vrot.slane (!%p316_p9), %v2296_v18, %v2675_v8  ;;  %v2742_v39 = vrot.slane (!%p316_p9), %v2301_v34, %v2678_v9  ;;  %v2754_v45 = vrot.slane (!%p316_p9), %v2301_v34, %v2675_v8  ;;  %v2321_v34 = vld [vmem:[%s3075_s2 + $0x38] sm:$0xff] (!%p316_p9) }
  0x15   : > { %s354_s25 = scalar_select %p353_p10, %s2591_s17, 1  ;;  %v2774_v52 = vrot.slane %v2310_v49, %v2678_v9  ;;  %vm1057_vm7 = vcmp.lt.s32.totalorder %v2672_v7, 113  ;;  %v2790_v59 = vrot.slane %v2310_v49, %v2675_v8  ;;  %v2797_v61 = vrot.slane %v2315_v56, %v2678_v9 }
  0x16   : > { %vm1163_vm8 = vcmp.lt.s32.totalorder %v2672_v7, 112  ;;  %v2813_v10 = vrot.slane %v2315_v56, %v2675_v8  ;;  %vm1269_vm9 = vcmp.lt.s32.totalorder %v2672_v7, 111  ;;  %vm1381_vm10 = vcmp.lt.s32.totalorder %v2670_v6, 4 }
  0x17   : > { %s2352_s26 = sshll.u32 %s354_s25, 3  ;;  %s2511_s25 = smov 112   ;;  %vm1443_vm13 = vcmask 64512  }
  0x18   : > { %s357_s29 = scalar_lea.vmem %s3073_s0, %s2352_s26  ;;  %s3084_s26 = smov 111  }
  0x19   : > { %v2625_v1 = vld [vmem:[%s357_s29] sm:$0xff] }
  0x1a   : > { %449 = vrot.lane.b32.xlu1 %v2625_v1, %s2505_s30  ;;  %473 = vrot.lane.b32.xlu0 %v2625_v1, %s2506_s11  ;;  %v2633_v2 = vcombine.high %v2625_v1, %v2625_v1 }
  0x1c   : > { %2285 = vmatprep.subr.msk.mxu0 %vm372_vm0, %v2633_v2 }
  0x1d   : > { %2286 = vmatpush1.msk.msra.mxu0 %vm372_vm0, %v2625_v1 }
  0x1e   : > { %451 = vrot.lane.b32.xlu1 %v2633_v2, %s2505_s30  ;;  %475 = vrot.lane.b32.xlu0 %v2633_v2, %s2506_s11 }
  0x22   : > { %659 = vrot.lane.b32.xlu1 %v2633_v2, %s2507_s12  ;;  %657 = vrot.lane.b32.xlu0 %v2625_v1, %s2507_s12 }
  0x26   : > { %765 = vrot.lane.b32.xlu1 %v2633_v2, %s2508_s18  ;;  %763 = vrot.lane.b32.xlu0 %v2625_v1, %s2508_s18 }
  0x2a   : > { %949 = vrot.lane.b32.xlu1 %v2633_v2, %s2509_s20  ;;  %947 = vrot.lane.b32.xlu0 %v2625_v1, %s2509_s20 }
  0x2e   : > { %1055 = vrot.lane.b32.xlu1 %v2633_v2, %s2510_s21  ;;  %1053 = vrot.lane.b32.xlu0 %v2625_v1, %s2510_s21 }
  0x32   : > { %1161 = vrot.lane.b32.xlu1 %v2633_v2, %s2511_s25  ;;  %1159 = vrot.lane.b32.xlu0 %v2625_v1, %s2511_s25 }
  0x36   : > { %1267 = vrot.lane.b32.xlu1 %v2633_v2, %s3084_s26  ;;  %1265 = vrot.lane.b32.xlu0 %v2625_v1, %s3084_s26 }
  0x3a   : > { %1374 = vperm.xlu0 %2435, %v1371_v3   ;;  %v2320_v3 = vld [vmem:[%s3074_s1 + $0xe] sm:$0x3] }
  0x8c   : > { %v450_v12 = vpop.permute.xlu1 %449  ;;  %v474_v13 = vpop.permute.xlu0 %473 }
  0x90   : > { %v452_v19 = vpop.permute.xlu1 %451  ;;  %v476_v20 = vpop.permute.xlu0 %475 }
  0x91   : > { %v456_v21 = vsel %vm455_vm1, %v450_v12, %v452_v19  ;;  %v457_v22 = vsel %vm455_vm1, %v452_v19, %v450_v12  ;;  %v478_v23 = vsel %vm477_vm2, %v474_v13, %v476_v20  ;;  %v479_v24 = vsel %vm477_vm2, %v476_v20, %v474_v13  ;;  %v2311_v19 = vld [vmem:[%s3075_s2 + $0x28] sm:$0xff] }
  0x92   : > { %v471_v25 = vmul.f32 %v2688_v14, %v456_v21  ;;  %v493_v26 = vmul.f32 %v2692_v15, %v479_v24  ;;  %v494_v27 = vmul.f32 %v2695_v16, %v478_v23  ;;  %v470_v29 = vmul.f32 %v2698_v17, %v457_v22  ;;  %v2325_v21 = vld [vmem:[%s3074_s1 + $0x10] sm:$0x3] }
  0x93   : > { %v2820_v12 = vrot.slane %v2320_v3, %v2678_v9  ;;  %v2836_v24 = vrot.slane %v2320_v3, %v2675_v8 }
  0x94   : > { %2290 = vmatprep.subr.msk.mxu1 %vm372_vm0, %v494_v27  ;;  %v660_v31 = vpop.permute.xlu1 %659  ;;  %v658_v32 = vpop.permute.xlu0 %657 }
  0x95   : > { %2291 = vmatpush1.msk.msra.mxu1 %vm372_vm0, %v493_v26  ;;  %v662_v33 = vsel %vm661_vm3, %v658_v32, %v660_v31  ;;  %v663_v37 = vsel %vm661_vm3, %v660_v31, %v658_v32  ;;  %v2843_v26 = vrot.slane %v2325_v21, %v2678_v9  ;;  %v2855_v32 = vrot.slane %v2325_v21, %v2675_v8  ;;  %v2326_v8 = vld [vmem:[%s3075_s2 + $0x40] sm:$0xff] }
  0x96   : > { %2292 = vmatmul.mubr.msk.f32.vlgmr.msra.gmra.mrb[0].mxu1 %vm368_vm4, %v2289_v30  ;;  %2293 = vmatprep.subr.msk.mxu1 %vm372_vm0, %v471_v25  ;;  %v678_v35 = vmul.f32 %v2716_v28, %v662_v33  ;;  %v677_v42 = vmul.f32 %v2735_v36, %v663_v37  ;;  %v2316_v30 = vld [vmem:[%s3075_s2 + $0x30] sm:$0xff] }
  0x97   : > { %2294 = vmatpush1.msk.msra.mxu1 %vm372_vm0, %v470_v29  ;;  %650 = vmatprep.mubr.f32.mxu1 %v2504_v0 }
  0x98   : > { %2298 = vmatprep.subr.msk.mxu1 %vm372_vm0, %v678_v35  ;;  %v766_v38 = vpop.permute.xlu1 %765  ;;  %v764_v40 = vpop.permute.xlu0 %763 }
  0x99   : > { %v768_v41 = vsel %vm767_vm5, %v764_v40, %v766_v38  ;;  %v769_v46 = vsel %vm767_vm5, %v766_v38, %v764_v40 }
  0x9a   : > { %v784_v44 = vmul.f32 %v2742_v39, %v768_v41  ;;  %v783_v47 = vmul.f32 %v2754_v45, %v769_v46 }
  0x9c   : > { %v950_v50 = vpop.permute.xlu1 %949  ;;  %v948_v51 = vpop.permute.xlu0 %947 }
  0x9d   : > { %v953_v53 = vsel %vm951_vm6, %v950_v50, %v948_v51  ;;  %v952_v60 = vsel %vm951_vm6, %v948_v51, %v950_v50 }
  0x9e   : > { %2295 = vmatmul.mubr.msk.f32.vlgmr.msra.gmra.mrb[0].mxu1 %vm368_vm4, %v472_v43  ;;  %v968_v55 = vmul.f32 %v2774_v52, %v953_v53  ;;  %v967_v63 = vmul.f32 %v2790_v59, %v952_v60 }
  0x9f   : > { %2299 = vmatpush1.msk.msra.mxu1 %vm372_vm0, %v677_v42  ;;  %754 = vmatprep.mubr.f32.mxu1 %v2504_v0 }
  0xa0   : > { %2303 = vmatprep.subr.msk.mxu1 %vm372_vm0, %v784_v44  ;;  %v1056_v57 = vpop.permute.xlu1 %1055  ;;  %v1054_v58 = vpop.permute.xlu0 %1053 }
  0xa1   : > { %v1059_v62 = vsel %vm1057_vm7, %v1056_v57, %v1054_v58  ;;  %v1058_v11 = vsel %vm1057_vm7, %v1054_v58, %v1056_v57  ;;  %v1395_v57 = vld [vmem:[%s3077_s4] sm:$0xff] }
  0xa2   : > { %v1073_v18 = vmul.f32 %v2813_v10, %v1058_v11 }
  0xa4   : > { %v1162_v4 = vpop.permute.xlu1 %1161  ;;  %v1160_v5 = vpop.permute.xlu0 %1159 }
  0xa5   : > { %v1165_v13 = vsel %vm1163_vm8, %v1162_v4, %v1160_v5  ;;  %v1164_v25 = vsel %vm1163_vm8, %v1160_v5, %v1162_v4 }
  0xa6   : > { %2300 = vmatmul.mubr.msk.f32.vlgmr.msra.gmra.mrb[0].mxu1 %vm368_vm4, %v2297_v48  ;;  %v1180_v20 = vmul.f32 %v2820_v12, %v1165_v13  ;;  %v1179_v29 = vmul.f32 %v2836_v24, %v1164_v25 }
  0xa7   : > { %2304 = vmatpush1.msk.msra.mxu1 %vm372_vm0, %v783_v47  ;;  %860 = vmatprep.mubr.f32.mxu1 %v2504_v0  ;;  %v359_v47 = vld [vmem:[%s3081_s8] sm:$0xff] }
  0xa8   : > { %2307 = vmatprep.subr.msk.mxu1 %vm372_vm0, %v2633_v2  ;;  %v1074_v2 = vmul.f32 %v2797_v61, %v1059_v62  ;;  %v1268_v22 = vpop.permute.xlu1 %1267  ;;  %v1266_v23 = vpop.permute.xlu0 %1265  ;;  %2287 = vmatmul.mubr.msk.f32.vlgmr.msra.gmra.mrb[0].mxu0 %vm368_vm4, %v359_v47 }
  0xa9   : > { %v1271_v27 = vsel %vm1269_vm9, %v1268_v22, %v1266_v23  ;;  %v1270_v9 = vsel %vm1269_vm9, %v1266_v23, %v1268_v22  ;;  %1511 = vmatprep.mubr.f32.mxu0 %v2504_v0  ;;  %v2186_v23 = vld [vmem:[%s3080_s7] sm:$0xff] }
  0xaa   : > { %v1286_v31 = vmul.f32 %v2843_v26, %v1271_v27  ;;  %v1285_v33 = vmul.f32 %v2855_v32, %v1270_v9  ;;  %v360_v27 = vld [vmem:[%s3082_s9] sm:$0xff] }
  0xae   : > { %2305 = vmatmul.mubr.msk.f32.vlgmr.msra.gmra.mrb[0].mxu1 %vm368_vm4, %v2302_v54 }
  0xaf   : > { %2308 = vmatpush1.msk.msra.mxu1 %vm372_vm0, %v2625_v1  ;;  %938 = vmatprep.mubr.f32.mxu1 %v2504_v0  ;;  %v2306_v1 = vld [vmem:[%s3075_s2 + $0x20] sm:$0xff] }
  0xb0   : > { %2312 = vmatprep.subr.msk.mxu1 %vm372_vm0, %v968_v55 }
  0xb6   : > { %2309 = vmatmul.mubr.msk.f32.vlgmr.msra.gmra.mrb[0].mxu1 %vm368_vm4, %v2306_v1 }
  0xb7   : > { %2313 = vmatpush1.msk.msra.mxu1 %vm372_vm0, %v967_v63  ;;  %1044 = vmatprep.mubr.f32.mxu1 %v2504_v0  ;;  %v1400_v63 = vld [vmem:[%s3078_s5] sm:$0xff] }
  0xb8   : > { %2317 = vmatprep.subr.msk.mxu1 %vm372_vm0, %v1074_v2 }
  0xb9   : > { %v1375_v35 = vpop.permute.xlu0 %1374 }
  0xbe   : > { %2314 = vmatmul.mubr.msk.f32.vlgmr.msra.gmra.mrb[0].mxu1 %vm368_vm4, %v2311_v19 }
  0xbf   : > { %2318 = vmatpush1.msk.msra.mxu1 %vm372_vm0, %v1073_v18  ;;  %1150 = vmatprep.mubr.f32.mxu1 %v2504_v0 }
  0xc0   : > { %2322 = vmatprep.subr.msk.mxu1 %vm372_vm0, %v1180_v20 }
  0xc6   : > { %2319 = vmatmul.mubr.msk.f32.vlgmr.msra.gmra.mrb[0].mxu1 %vm368_vm4, %v2316_v30 }
  0xc7   : > { %2323 = vmatpush1.msk.msra.mxu1 %vm372_vm0, %v1179_v29  ;;  %1256 = vmatprep.mubr.f32.mxu1 %v2504_v0 }
  0xc8   : > { %2327 = vmatprep.subr.msk.mxu1 %vm372_vm0, %v1286_v31 }
  0xce   : > { %2324 = vmatmul.mubr.msk.f32.vlgmr.msra.gmra.mrb[0].mxu1 %vm368_vm4, %v2321_v34 }
  0xcf   : > { %2328 = vmatpush1.msk.msra.mxu1 %vm372_vm0, %v1285_v33  ;;  %1362 = vmatprep.mubr.f32.mxu1 %v2504_v0 }
  0xd6   : > { %2329 = vmatmul.mubr.msk.f32.vlgmr.msra.gmra.mrb[0].mxu1 %vm368_vm4, %v2326_v8 }
 0x17b   : > { %v2921_v25 = vpop.f32.mrb[0].mxu0 }
 0x17c   : > { %v2928_v29 = vpop.f32.mrb[1].mxu0 }
 0x1a9   : > { %v1364_v37 = vpop.f32.mrb[0].mxu1 }
 0x1aa   : > { %v1377_v38 = vadd.f32 %v1375_v35, %v1364_v37  ;;  %v1366_v40 = vpop.f32.mrb[1].mxu1  ;;  %v2330_v37 = vld [vmem:[%s3079_s6 + $0x8] sm:$0xff] }
 0x1ab   : > { %v1378_v41 = vadd.f32 %v1375_v35, %v1366_v40 }
 0x1ac   : > { %v1386_v42 = vmul.f32 %v1377_v38, %v1377_v38 }
 0x1ad   : > { %v1382_v43 = vadd.f32 %v1378_v41, %v1377_v38  ;;  %v1387_v44 = vmul.f32 %v1378_v41, %v1378_v41 }
 0x1af   : > { %1383 = vadd.xlane.f32.xlu1 %v1382_v43  ;;  %v1388_v46 = vadd.f32 %v1387_v44, %v1386_v42 }
 0x1b1   : > { %1389 = vadd.xlane.f32.xlu0 %v1388_v46 }
 0x23c   : > { %v1384_v48 = vpop.xlane.xlu1 %1383 }
 0x23d   : > { %v1385_v49 = vmul.f32 0.00390625, %v1384_v48 }
 0x23e   : > { %v1390_v50 = vpop.xlane.xlu0 %1389 }
 0x23f   : > { %v1392_v51 = vmul.f32 %v1385_v49, %v1385_v49  ;;  %v1391_v53 = vmul.f32 0.00390625, %v1390_v50 }
 0x241   : > { %v1393_v54 = vsub.f32 %v1391_v53, %v1392_v51  ;;  %v2333_v53 = vld [vmem:[%s3079_s6 + $0x10] sm:$0xff] }
 0x243   : > { %v1394_v55 = vmax.f32 %v1393_v54, 0.0 }
 0x245   : > { %v1396_v56 = vadd.f32 1e-05, %v1394_v55 }
 0x247   : > { %2438 = vrsqrt.f32 %v1396_v56  ;;  %v2335_v56 = vld [vmem:[%s3079_s6 + $0x18] sm:$0xff] }
 0x251   : > { %v2439_v58 = vpop.eup %2438 }
 0x252   : > { %v1398_v60 = vmul.f32 %v2439_v58, %v1395_v57 }
 0x254   : > { %v1399_v62 = vsel %vm1381_vm10, %v1398_v60, 1.0 }
 0x255   : > { %1406 = vperm.xlu1 %2436, %v1399_v62   ;;  %v1401_v1 = vmul.f32 %v1399_v62, %v1385_v49 }
 0x257   : > { %v1402_v2 = vsub.f32 %v1400_v63, %v1401_v1  ;;  %v2337_v63 = vld [vmem:[%s3079_s6 + $0x20] sm:$0xff] }
 0x259   : > { %v1403_v3 = vsel %vm1381_vm10, %v1402_v2, 0.0 }
 0x25a   : > { %1413 = vperm.xlu0 %2435, %v1403_v3  }
 0x2d4   : > { %v1407_v4 = vpop.permute.xlu1 %1406 }
 0x2d5   : > { %v1409_v5 = vmul.f32 %v1407_v4, %v1377_v38  ;;  %v1410_v11 = vmul.f32 %v1407_v4, %v1378_v41 }
 0x2d9   : > { %v1414_v13 = vpop.permute.xlu0 %1413 }
 0x2da   : > { %v1416_v18 = vadd.f32 %v1414_v13, %v1409_v5  ;;  %v1417_v19 = vadd.f32 %v1414_v13, %v1410_v11 }
 0x2dc   : > { %vm1418_vm11 = vcmp.ge.f32.partialorder %v1416_v18, 0.0  ;;  %v1420_v20 = vmul.f32 0.1, %v1416_v18  ;;  %v1421_v6 = vmul.f32 0.1, %v1417_v19  ;;  %vm1419_vm12 = vcmp.ge.f32.partialorder %v1417_v19, 0.0 }
 0x2de   : > { %v2884_v21 = vsel %vm1418_vm11, %v1416_v18, %v1420_v20  ;;  %v2890_v22 = vsel %vm1419_vm12, %v1417_v19, %v1421_v6 }
 0x2df   : > { %1424 = vrot.lane.b32.xlu0 %v2884_v21, %s2505_s30  ;;  %1433 = vrot.lane.b32.xlu1 %v2884_v21, %s2506_s11 }
 0x2e3   : > { %1592 = vrot.lane.b32.xlu0 %v2884_v21, %s2507_s12  ;;  %1435 = vrot.lane.b32.xlu1 %v2890_v22, %s2506_s11  ;;  %s3088_s11 = smov 111  }
 0x2e7   : > { %1678 = vrot.lane.b32.xlu0 %v2884_v21, %s2508_s18  ;;  %1426 = vrot.lane.b32.xlu1 %v2890_v22, %s2505_s30  ;;  %s350_s30 = sand.u32 1, %s2494_s14  }
 0x2eb   : > { %1842 = vrot.lane.b32.xlu0 %v2884_v21, %s2509_s20  ;;  %1594 = vrot.lane.b32.xlu1 %v2890_v22, %s2507_s12  ;;  %s2282_s12 = sshll.u32 %s350_s30, 4 }
 0x2ef   : > { %1928 = vrot.lane.b32.xlu0 %v2884_v21, %s2510_s21  ;;  %1680 = vrot.lane.b32.xlu1 %v2890_v22, %s2508_s18  ;;  %s2353_s18 = sshll.u32 %s2591_s17, 8  ;;  %s2205_s17 = scalar_lea.sflag [#allocation3], %s350_s30 }
 0x2f0   : > { %s3031_s29 = scalar_lea.hbm %s3083_s10, %s2353_s18 }
 0x2f3   : > { %2014 = vrot.lane.b32.xlu0 %v2884_v21, %s2511_s25  ;;  %1844 = vrot.lane.b32.xlu1 %v2890_v22, %s2509_s20  ;;  %s352_s20 = scalar_lea.vmem [#allocation2], %s2282_s12 }
 0x2f7   : > { %2100 = vrot.lane.b32.xlu0 %v2884_v21, %s3088_s11  ;;  %1930 = vrot.lane.b32.xlu1 %v2890_v22, %s2510_s21  ;;  %s2219_s21 = sshll.u32 %s352_s20, 4  ;;  %s3033_s21 = int_to_ptr.vmem [resolvable:$true] %s2219_s21 }
 0x2f8   : > { %s2440_s27 = scalar_lea.vmem %s3033_s21, 256 }
 0x2f9   : > { %p2441_p11 = scmp.ne.s32.totalorder %s3033_s21, %s2440_s27 }
 0x2fb   : > { %2189 = vperm.xlu0 %2435, %v2186_v23   ;;  %2016 = vrot.lane.b32.xlu1 %v2890_v22, %s2511_s25  ;;  %p2442_p12 = pnand %p2441_p11, %p2608_p5 }
 0x2fd   : > { %p2443_p13 = pneg %p2442_p12 }
 0x2ff   : > { %2102 = vrot.lane.b32.xlu1 %v2890_v22, %s3088_s11  ;;  %s2444_s11 = sshll.u32 %s2514_s28, 4  ;;  %s2445_s11 = int_to_ptr.vmem [resolvable:$false] %s2444_s11 }
 0x300   : > { %s2446_s12 = scalar_lea.vmem %s2445_s11, 512  ;;  %p2447_p0 = scmp.lt.s32.totalorder %s3033_s21, %s2445_s11 }
 0x301   : > { %p2448_p1 = scmp.lt.s32.totalorder %s2446_s12, %s2440_s27 }
 0x303   : > { %363 = vperm.xlu1 %2436, %v360_v27   ;;  %p2449_p2 = por %p2448_p1, %p2447_p0 }
 0x305   : > { %p2450_p3 = pnand %p2449_p2, %p2443_p13 }
 0x351   : > { %v1434_v30 = vpop.permute.xlu1 %1433  ;;  %v1425_v31 = vpop.permute.xlu0 %1424 }
 0x355   : > { %v1436_v9 = vpop.permute.xlu1 %1435  ;;  %v1593_v42 = vpop.permute.xlu0 %1592 }
 0x356   : > { %v1437_v33 = vsel %vm477_vm2, %v1434_v30, %v1436_v9  ;;  %v1438_v34 = vsel %vm477_vm2, %v1436_v9, %v1434_v30 }
 0x357   : > { %v1439_v8 = vmul.f32 %v1438_v34, %v2692_v15  ;;  %v1440_v35 = vmul.f32 %v1437_v33, %v2695_v16 }
 0x359   : > { %v1427_v38 = vpop.permute.xlu1 %1426  ;;  %1447 = vmatprep.subr.mxu0 %v1440_v35 }
 0x35a   : > { %v1428_v40 = vsel %vm455_vm1, %v1425_v31, %v1427_v38  ;;  %v1429_v41 = vsel %vm455_vm1, %v1427_v38, %v1425_v31  ;;  %1448 = vmatpush1.msra.mxu0 %v1439_v8 }
 0x35b   : > { %v1430_v43 = vmul.f32 %v1429_v41, %v2698_v17  ;;  %v1431_v15 = vmul.f32 %v1428_v40, %v2688_v14  ;;  %2331 = vmatmul.mubr.msk.f32.vlgmr.msra.gmra.mrb[2].mxu0 %vm1443_vm13, %v2330_v37  ;;  %v1432_v17 = vld [vmem:[%s3079_s6] sm:$0xff]  ;;  %v1679_v14 = vpop.permute.xlu0 %1678 }
 0x35c   : > { %1585 = vmatprep.mubr.f32.mxu0 %v2504_v0 }
 0x35d   : > { %v1595_v16 = vpop.permute.xlu1 %1594  ;;  %1521 = vmatprep.subr.mxu0 %v1431_v15 }
 0x35e   : > { %v1596_v44 = vsel %vm661_vm3, %v1593_v42, %v1595_v16  ;;  %1522 = vmatpush1.msra.mxu0 %v1430_v43  ;;  %v1597_v46 = vsel %vm661_vm3, %v1595_v16, %v1593_v42 }
 0x35f   : > { %v1599_v47 = vmul.f32 %v1596_v44, %v2716_v28  ;;  %v1598_v49 = vmul.f32 %v1597_v46, %v2735_v36  ;;  %v1843_v54 = vpop.permute.xlu0 %1842 }
 0x361   : > { %v1681_v48 = vpop.permute.xlu1 %1680  ;;  %1605 = vmatprep.subr.mxu0 %v1599_v47 }
 0x362   : > { %v1682_v50 = vsel %vm767_vm5, %v1679_v14, %v1681_v48  ;;  %v1683_v28 = vsel %vm767_vm5, %v1681_v48, %v1679_v14 }
 0x363   : > { %v1685_v51 = vmul.f32 %v1682_v50, %v2742_v39  ;;  %2332 = vmatmul.mubr.msk.f32.vlgmr.msra.gmra.mrb[2].mxu0 %vm1443_vm13, %v1432_v17  ;;  %v1684_v36 = vmul.f32 %v1683_v28, %v2754_v45  ;;  %v1929_v58 = vpop.permute.xlu0 %1928 }
 0x364   : > { %1606 = vmatpush1.msra.mxu0 %v1598_v49  ;;  %1669 = vmatprep.mubr.f32.mxu0 %v2504_v0 }
 0x365   : > { %1691 = vmatprep.subr.mxu0 %v1685_v51  ;;  %v1845_v39 = vpop.permute.xlu1 %1844 }
 0x366   : > { %v1847_v55 = vsel %vm951_vm6, %v1845_v39, %v1843_v54  ;;  %v1846_v60 = vsel %vm951_vm6, %v1843_v54, %v1845_v39 }
 0x367   : > { %v1849_v57 = vmul.f32 %v1847_v55, %v2774_v52  ;;  %v1848_v52 = vmul.f32 %v1846_v60, %v2790_v59  ;;  %v2015_v3 = vpop.permute.xlu0 %2014  ;;  %v2339_v59 = vld [vmem:[%s3079_s6 + $0x28] sm:$0xff] }
 0x369   : > { %v1931_v45 = vpop.permute.xlu1 %1930 }
 0x36a   : > { %v1933_v62 = vsel %vm1057_vm7, %v1931_v45, %v1929_v58  ;;  %v1932_v4 = vsel %vm1057_vm7, %v1929_v58, %v1931_v45 }
 0x36b   : > { %2334 = vmatmul.mubr.msk.f32.vlgmr.msra.gmra.mrb[2].mxu0 %vm1443_vm13, %v2333_v53  ;;  %v1935_v1 = vmul.f32 %v1933_v62, %v2797_v61  ;;  %v1934_v61 = vmul.f32 %v1932_v4, %v2813_v10  ;;  %v2101_v18 = vpop.permute.xlu0 %2100  ;;  %v2341_v10 = vld [vmem:[%s3079_s6 + $0x30] sm:$0xff] }
 0x36c   : > { %1692 = vmatpush1.msra.mxu0 %v1684_v36  ;;  %1755 = vmatprep.mubr.f32.mxu0 %v2504_v0 }
 0x36d   : > { %1769 = vmatprep.subr.mxu0 %v2890_v22  ;;  %v2017_v2 = vpop.permute.xlu1 %2016  ;;  %v2343_v22 = vld [vmem:[%s3079_s6 + $0x38] sm:$0xff] }
 0x36e   : > { %v2019_v5 = vsel %vm1163_vm8, %v2017_v2, %v2015_v3  ;;  %v2018_v19 = vsel %vm1163_vm8, %v2015_v3, %v2017_v2 }
 0x36f   : > { %v2021_v11 = vmul.f32 %v2019_v5, %v2820_v12  ;;  %v2020_v12 = vmul.f32 %v2018_v19, %v2836_v24  ;;  %v2345_v24 = vld [vmem:[%s3079_s6 + $0x40] sm:$0xff] }
 0x371   : > { %v2103_v13 = vpop.permute.xlu1 %2102 }
 0x372   : > { %v2105_v20 = vsel %vm1269_vm9, %v2103_v13, %v2101_v18 }
 0x373   : > { %2336 = vmatmul.mubr.msk.f32.vlgmr.msra.gmra.mrb[2].mxu0 %vm1443_vm13, %v2335_v56  ;;  %v2107_v6 = vmul.f32 %v2105_v20, %v2843_v26 }
 0x374   : > { %1770 = vmatpush1.msra.mxu0 %v2884_v21  ;;  %1833 = vmatprep.mubr.f32.mxu0 %v2504_v0  ;;  %v2104_v21 = vsel %vm1269_vm9, %v2101_v18, %v2103_v13 }
 0x375   : > { %1855 = vmatprep.subr.mxu0 %v1849_v57  ;;  %v2106_v23 = vmul.f32 %v2104_v21, %v2855_v32 }
 0x37a   : > { %v2190_v7 = vpop.permute.xlu0 %2189 }
 0x37b   : > { %2338 = vmatmul.mubr.msk.f32.vlgmr.msra.gmra.mrb[2].mxu0 %vm1443_vm13, %v2337_v63 }
 0x37c   : > { %1856 = vmatpush1.msra.mxu0 %v1848_v52  ;;  %1919 = vmatprep.mubr.f32.mxu0 %v2504_v0 }
 0x37d   : > { %1941 = vmatprep.subr.mxu0 %v1935_v1 }
 0x382   : > { %v364_v27 = vpop.permute.xlu1 %363 }
 0x383   : > { %2340 = vmatmul.mubr.msk.f32.vlgmr.msra.gmra.mrb[2].mxu0 %vm1443_vm13, %v2339_v59  ;;  %v444_v33 = vadd.f32 %v2921_v25, %v364_v27  ;;  %v446_v34 = vadd.f32 %v2928_v29, %v364_v27 }
 0x384   : > { %1942 = vmatpush1.msra.mxu0 %v1934_v61  ;;  %2005 = vmatprep.mubr.f32.mxu0 %v2504_v0 }
 0x385   : > { %2027 = vmatprep.subr.mxu0 %v2021_v11 }
 0x38b   : > { %2342 = vmatmul.mubr.msk.f32.vlgmr.msra.gmra.mrb[2].mxu0 %vm1443_vm13, %v2341_v10 }
 0x38c   : > { %2028 = vmatpush1.msra.mxu0 %v2020_v12  ;;  %2091 = vmatprep.mubr.f32.mxu0 %v2504_v0 }
 0x38d   : > { %2113 = vmatprep.subr.mxu0 %v2107_v6 }
 0x393   : > { %2344 = vmatmul.mubr.msk.f32.vlgmr.msra.gmra.mrb[2].mxu0 %vm1443_vm13, %v2343_v22 }
 0x394   : > { %2114 = vmatpush1.msra.mxu0 %v2106_v23  ;;  %2177 = vmatprep.mubr.f32.mxu0 %v2504_v0 }
 0x39b   : > { %2346 = vmatmul.mubr.msk.f32.vlgmr.msra.gmra.mrb[2].mxu0 %vm1443_vm13, %v2345_v24 }
 0x46e   : > { %v2179_v26 = vpop.f32.mrb[2].mxu0 }
 0x46f   : > { %v2192_v30 = vadd.f32 %v2190_v7, %v2179_v26  ;;  %v2181_v31 = vpop.f32.mrb[3].mxu0 }
 0x470   : > { %v2193_v32 = vadd.f32 %v2190_v7, %v2181_v31 }
 0x471   : > { %vm2194_vm14 = vcmp.ge.f32.partialorder %v2192_v30, 0.0  ;;  %v2196_v9 = vmul.f32 0.1, %v2192_v30 }
 0x472   : > { %vm2195_vm15 = vcmp.ge.f32.partialorder %v2193_v32, 0.0  ;;  %v2197_v0 = vmul.f32 0.1, %v2193_v32 }
 0x473   : > { %v2198_v8 = vsel %vm2194_vm14, %v2192_v30, %v2196_v9 }
 0x474   : > { %v2200_v35 = vadd.f32 %v2198_v8, %v444_v33  ;;  %v2199_v37 = vsel %vm2195_vm15, %v2193_v32, %v2197_v0 }
 0x475   : > { %v2201_v38 = vadd.f32 %v2199_v37, %v446_v34 }
 0x476   : > { %2202 = vst [vmem:[%s352_s20] sm:$0xff] %v2200_v35 }
 0x477   : > { %2203 = vst [vmem:[%s352_s20 + $0x8] sm:$0xff] %v2201_v38 }
 0x478   : > { %2453 = shalt.err (!%p2450_p3)
}
 0x479   : > { %s2454_s30 = scalar_lea.hbm %s3031_s29, 256  ;;  %s2458_s25 = scalar_lea.hbm %s3083_s10, 512 }
 0x47a   : > { %p2455_p4 = scmp.ne.s32.totalorder %s3031_s29, %s2454_s30  ;;  %p2459_p9 = scmp.lt.u32.totalorder %s3031_s29, %s3083_s10 }
 0x47b   : > { %p2460_p10 = scmp.lt.u32.totalorder %s2458_s25, %s2454_s30  ;;  %p2462_p12 = scmp.lt.u32.totalorder %s2454_s30, %s3031_s29 }
 0x47c   : > { %p2456_p7 = pnand %p2455_p4, %p2608_p5 }
 0x47d   : > { %p2461_p11 = por %p2460_p10, %p2459_p9 }
 0x47e   : > { %p2457_p8 = pneg %p2456_p7 }
 0x47f   : > { %p2463_p13 = por %p2462_p12, %p2461_p11 }
 0x481   : > { %p2464_p0 = pnand %p2463_p13, %p2457_p8 }
 0x483   : > { %2467 = shalt.err (!%p2464_p0)
}
 0x484   : > { %2386 = dma.vmem_to_hbm [thread:$0]  (%p2608_p5), %s3033_s21, 256, %s3031_s29, %s2205_s17  }
 0x485 PF: > { %p2392_p1 = scmp.ge.s32.totalorder %s2502_s16, 2  ;;  %s2231_s27 = sand.u32 1, %s2490_s13  }
 0x486   : > { %s2232_s11 = scalar_lea.sflag [#allocation3], %s2231_s27 }
 0x487   : > { %p2389_p2 = pnand %p2392_p1, %p2612_p6 }
 0x489   : > { %2485 = dma.done.wait (!%p2389_p2), %s2232_s11, 256  }
 0x48a   : > { %2487 = vsyncadd (!%p2389_p2), %s2232_s11, 4294967040  ;;  %p20_p3 = scmp.ge.s32.totalorder %s2595_s19, 4   ;;  %s3089_s13 = smov %s2494_s14 }
 0x48b   : > { %s3090_s14 = smov %s2498_s15  ;;  %s3091_s15 = smov %s2606_s22 }
 0x48c   : > { %s3092_s16 = smov %s2595_s19  ;;  %22 = sbr.rel (!%p20_p3) target bundleno = 3 (0x3), region = 118 }
 0x493   :  { %2237 = vsyncpa [#allocation3], 1 }
 0x494   :  { %2239 = vsyncpa [#allocation3 + $0x1], 1 }

</bundles_post_ra>
